<compile_context>
chip_gen: v7x
topology: tpu7x:2x2x1
jax: 0.10.0
libtpu: 0.0.40
codegen_flags: <defaults>
</compile_context>

<pallas_src>
import functools

import numpy as np
import jax
import jax.numpy as jnp
from jax import lax
from jax.experimental import pallas as pl
from jax.experimental.pallas import tpu as pltpu

EPS = 1e-7
_SUM_LANES = 128                      # lane-dense per-sample scalar outputs
_UF_SMEM_BYTES_LIMIT = 256 * 1024     # conservative SMEM budget for the union-find kernel


def _round_up(x, m):
    return ((x + m - 1) // m) * m


@functools.lru_cache(maxsize=None)
def _vmem_limit_bytes():
    """Generation-aware VMEM limit: big blocks on v5e/v6e (128 MiB), headroom on v7x (64 MiB)."""
    try:
        cap = int(pltpu.get_tpu_info().vmem_capacity_bytes)
    except Exception:
        cap = 64 * 1024 * 1024
    if cap >= 128 * 1024 * 1024:
        return 96 * 1024 * 1024
    return min(48 * 1024 * 1024, (cap * 3) // 4)


def _choose_block_batch(b10, c, hw_pad, vmem_limit):
    """Samples per grid step: double-buffered in/out blocks + ~12 image-sized f32 temporaries
    must fit in the VMEM budget, and (when b10 > 1) keep >= 2 grid steps so both v7x
    TensorCores get work."""
    per_sample = (2 * (c + 1) + 12) * hw_pad * 4 + 4 * 2 * _SUM_LANES * 4
    cap = max(1, int(vmem_limit * 0.6) // per_sample)
    # TODO(synk): for huge H*W (per_sample > budget even at TB=1), tile HW into row strips
    # with a 1-row (W+1) halo instead of keeping whole planes resident.
    nsteps = 1 if b10 <= 1 else max(2, -(-b10 // cap))
    return -(-b10 // nsteps)


def _edge_masks(H, W, hw_pad):
    """{0,1} float mask rows, host-precomputed, DMA'd once and kept resident:
    row 0: right edge valid, row 1: down edge valid, row 2: diag edge / triangles valid,
    row 3: vertex inside the image (k < H*W)."""
    k = np.arange(hw_pad)
    hw = H * W
    col = k % W
    in_img = k < hw
    right_ok = (col < W - 1) & in_img
    down_ok = k < (H - 1) * W
    m = np.zeros((8, hw_pad), dtype=np.float32)
    m[0] = right_ok
    m[1] = down_ok
    m[2] = right_ok & down_ok
    m[3] = in_img
    return jnp.asarray(m)


# --------------------------------------------------------------------- stage 1: vector kernel
def _toploss_kernel(beta_ref, mask_ref, y_ref, sums_ref, *, W):
    """Fused softmax(channel 1) + clamp + masked Freudenthal filtration reductions.

    beta_ref: (TB, C, HW_pad)  NCHW input, spatial dims flattened (no host transpose)
    mask_ref: (8, HW_pad)      constant {0,1} boundary masks (rows 0..3 used)
    y_ref:    (TB, 1, HW_pad)  clamped channel-1 softmax (padded lanes hold 0.5, NOT 0)
    sums_ref: (TB, 2, 128)     row 0: sum(edges) - sum(triangles) + sum(vertices); row 1: max vertex
    """
    TB, C, HW_pad = beta_ref.shape

    x0 = beta_ref[:, 0, :]
    x1 = beta_ref[:, 1, :]
    if C == 2:
        # softmax channel 1 == sigmoid(x1 - x0); exact divide so the filtration values that
        # feed the persistence pairing are unperturbed.
        y = 1.0 / (1.0 + jnp.exp(x0 - x1))
    else:
        m = jnp.maximum(x0, x1)
        for c in range(2, C):
            m = jnp.maximum(m, beta_ref[:, c, :])
        num = jnp.exp(x1 - m)
        den = jnp.exp(x0 - m) + num
        for c in range(2, C):
            den = den + jnp.exp(beta_ref[:, c, :] - m)
        y = num / den
    y = jnp.clip(y, EPS, 1.0 - EPS)
    y_ref[:, 0, :] = y

    m_r = mask_ref[0:1, :]      # (1, HW_pad) rows broadcast over TB; mask-multiply, no iota/rem
    m_d = mask_ref[1:2, :]
    m_rd = mask_ref[2:3, :]
    m_v = mask_ref[3:4, :]

    # Freudenthal neighbors via XLU rolls: +1 (right), +W (down), +W+1 (down-right).
    y_r = pltpu.roll(y, HW_pad - 1, axis=1)
    e_h = jnp.minimum(y, y_r)
    y_d = pltpu.roll(y, HW_pad - W, axis=1)
    e_v = jnp.minimum(y, y_d)
    y_dr = pltpu.roll(y_r, HW_pad - W, axis=1)          # roll-of-roll -> y[k + W + 1]

    # Single fused accumulator: sum(edge f) - sum(triangle f) + sum(vertex f).
    acc = m_r * e_h + m_d * e_v + m_v * y
    acc = acc + m_rd * (jnp.minimum(y, y_dr)
                        - jnp.minimum(e_h, y_dr)        # upper triangle {v, v+1, v+W+1}
                        - jnp.minimum(e_v, y_dr))       # lower triangle {v, v+W, v+W+1}

    s = jnp.sum(acc, axis=1, keepdims=True)             # (TB, 1)
    vmax = jnp.max(m_v * y, axis=1, keepdims=True)      # y > 0 so zero-masking is safe
    sums_ref[:, 0, :] = jnp.broadcast_to(s, (TB, _SUM_LANES))
    sums_ref[:, 1, :] = jnp.broadcast_to(vmax, (TB, _SUM_LANES))


def _toploss_pallas_stage(beta10):
    """beta10 (B10, C, H, W) -> (y (B10, HW_pad), esum-tsum+vsum (B10,), vmax (B10,))."""
    B10, C, H, W = beta10.shape
    if C < 2:
        raise ValueError("TopLoss needs at least 2 channels (uses channel 1).")
    if H < 2 or W < 2:
        raise ValueError("TopLoss requires H >= 2 and W >= 2.")
    HW = H * W
    HW_pad = _round_up(HW, 128)
    vmem_limit = _vmem_limit_bytes()
    TB = _choose_block_batch(B10, C, HW_pad, vmem_limit)
    B_pad = _round_up(B10, TB)

    # NCHW kept as-is: collapse H,W (free reshape); pad only when needed. No channel-major
    # transpose -> no extra HBM read+write of the input before the kernel.
    x = beta10.reshape(B10, C, HW).astype(jnp.float32)
    if B_pad != B10 or HW_pad != HW:
        x = jnp.pad(x, ((0, B_pad - B10), (0, 0), (0, HW_pad - HW)))
    masks = _edge_masks(H, W, HW_pad)

    y, sums = pl.pallas_call(
        functools.partial(_toploss_kernel, W=W),
        out_shape=(
            jax.ShapeDtypeStruct((B_pad, 1, HW_pad), jnp.float32),
            jax.ShapeDtypeStruct((B_pad, 2, _SUM_LANES), jnp.float32),
        ),
        grid=(B_pad // TB,),
        in_specs=[
            pl.BlockSpec((TB, C, HW_pad), lambda b: (b, 0, 0)),
            pl.BlockSpec((8, HW_pad), lambda b: (0, 0)),      # constant block: stays resident
        ],
        out_specs=(
            pl.BlockSpec((TB, 1, HW_pad), lambda b: (b, 0, 0)),
            pl.BlockSpec((TB, 2, _SUM_LANES), lambda b: (b, 0, 0)),
        ),
        compiler_params=pltpu.CompilerParams(
            dimension_semantics=("parallel",),   # >= 2 independent steps -> v7x 2-TC sharding
            vmem_limit_bytes=vmem_limit,
        ),
    )(x, masks)
    # y keeps its lane padding (padded lanes hold 0.5, never indexed by the pairing stage).
    return y[:B10, 0, :], sums[:B10, 0, 0], sums[:B10, 1, 0]


# ------------------------------------------------------------------ stage 2: union-find kernel
def _grid_edges(H, W):
    """Static Freudenthal 1-skeleton edge list (flat row-major endpoint indices)."""
    idx = np.arange(H * W, dtype=np.int32).reshape(H, W)
    eu = np.concatenate([idx[:, :-1].ravel(), idx[:-1, :].ravel(), idx[:-1, :-1].ravel()])
    ev = np.concatenate([idx[:, 1:].ravel(), idx[1:, :].ravel(), idx[1:, 1:].ravel()])
    return eu.astype(np.int32), ev.astype(np.int32)


def _uf_kernel(eu_ref, ev_ref, fe_ref, neg_ref, parent_ref):
    """Scalar-unit Kruskal union-find over one sample's pre-sorted edge tables (SMEM resident).

    eu_ref / ev_ref: (B10, E) int32 SMEM, fe_ref: (B10, E) f32 SMEM (sorted by decreasing
    filtration value); neg_ref: (1, 1, 128) VMEM output block; parent_ref: (V,) int32 SMEM.
    Writes sum of f(e) over merging (negative) edges, i.e. the max-spanning-tree weight.
    """
    b = pl.program_id(0)
    n_vertices = parent_ref.shape[0]
    n_edges = eu_ref.shape[1]

    def init_body(i, carry):
        parent_ref[i] = i
        return carry

    lax.fori_loop(0, n_vertices, init_body, 0)

    def find_root(i):
        def cond(state):
            j, pj = state
            return pj != j

        def body(state):
            _, pj = state
            return pj, parent_ref[pj]

        return lax.while_loop(cond, body, (i, parent_ref[i]))[0]

    def edge_body(k, neg):
        u = eu_ref[b, k]
        v = ev_ref[b, k]
        ru = find_root(u)
        rv = find_root(v)
        neg = neg + jnp.where(ru != rv, fe_ref[b, k], 0.0)
        parent_ref[rv] = ru        # union (no-op when already connected)
        parent_ref[u] = ru         # path shortening
        parent_ref[v] = ru
        return neg

    neg = lax.fori_loop(0, n_edges, edge_body, jnp.zeros((), jnp.float32))
    neg_ref[...] = jnp.full(neg_ref.shape, neg, jnp.float32)


def _neg_merge_pallas(eu_s, ev_s, fe_s, n_vertices):
    b10 = eu_s.shape[0]
    neg = pl.pallas_call(
        _uf_kernel,
        out_shape=jax.ShapeDtypeStruct((b10, 1, _SUM_LANES), jnp.float32),
        grid=(b10,),
        in_specs=[pl.BlockSpec(memory_space=pltpu.MemorySpace.SMEM) for _ in range(3)],
        out_specs=pl.BlockSpec((1, 1, _SUM_LANES), lambda b: (b, 0, 0)),
        scratch_shapes=[pltpu.SMEM((n_vertices,), jnp.int32)],
        # TODO(synk): flip to "parallel" (2-TC sharding) once per-core replication of the
        # unblocked SMEM edge tables is verified profitable; "arbitrary" is always safe.
        compiler_params=pltpu.CompilerParams(dimension_semantics=("arbitrary",)),
    )(eu_s, ev_s, fe_s)
    return neg[:, 0, 0]


def _neg_merge_lax(eu_s, ev_s, fe_s, n_vertices):
    """Batched lax fallback (identical math) for edge tables that do not fit in SMEM."""
    def one(eu1, ev1, fe1):
        def find_root(parent, i):
            def cond(state):
                j, pj = state
                return pj != j

            def body(state):
                _, pj = state
                return pj, parent[pj]

            return lax.while_loop(cond, body, (i, parent[i]))[0]

        def body(k, state):
            parent, neg = state
            u, v = eu1[k], ev1[k]
            ru = find_root(parent, u)
            rv = find_root(parent, v)
            neg = neg + jnp.where(ru != rv, fe1[k], 0.0)
            parent = parent.at[rv].set(ru)
            parent = parent.at[u].set(ru).at[v].set(ru)
            return parent, neg

        parent0 = jnp.arange(n_vertices, dtype=jnp.int32)
        _, neg = lax.fori_loop(0, eu1.shape[0], body,
                               (parent0, jnp.zeros((), jnp.float32)))
        return neg

    return jax.vmap(one)(eu_s, ev_s, fe_s)


def _uf_smem_bytes(b10, n_edges, n_vertices):
    rows = _round_up(b10, 8)
    lanes = _round_up(n_edges, 128)
    parent = 1 << max(4, (4 * n_vertices - 1).bit_length())
    return 3 * rows * lanes * 4 + parent


def _neg_merge_sums(y_flat, eu, ev, n_vertices, use_pallas):
    """Per-sample sum of f(e) over merging edges of the superlevel Kruskal pass."""
    fe = jnp.minimum(jnp.take(y_flat, eu, axis=1), jnp.take(y_flat, ev, axis=1))
    order = jnp.argsort(-fe, axis=1)                 # decreasing filtration order
    eu_s = jnp.asarray(eu)[order]
    ev_s = jnp.asarray(ev)[order]
    fe_s = jnp.take_along_axis(fe, order, axis=1)
    if use_pallas:
        return _neg_merge_pallas(eu_s.astype(jnp.int32), ev_s.astype(jnp.int32),
                                 fe_s, n_vertices)
    return _neg_merge_lax(eu_s, ev_s, fe_s, n_vertices)


# ----------------------------------------------------------------------------------- top loss
def top_loss(beta):
    """beta: (B, C, H, W) float32 -> scalar loss (matches TopLoss.forward)."""
    B, C, H, W = beta.shape
    B10 = B // 10
    if B10 == 0:
        # The PyTorch module also returns the unscaled 0 in this case.
        return jnp.zeros((), jnp.float32)
    beta10 = beta[:B10].astype(jnp.float32)

    y_flat, s, vmax = _toploss_pallas_stage(beta10)      # fused vector kernel

    eu, ev = _grid_edges(H, W)
    use_pallas_uf = _uf_smem_bytes(B10, eu.shape[0], H * W) <= _UF_SMEM_BYTES_LIMIT
    # TODO(synk): per-sample sort of the edge filtration values stays in XLA (jnp.argsort);
    # it has no cheap Pallas equivalent and is not the bottleneck.
    neg = _neg_merge_sums(y_flat, eu, ev, H * W, use_pallas_uf)

    # loss_i = H0 finite lengths + H1 finite lengths
    #        = (vsum - vmax - neg) + ((esum - neg) - tsum) = s - vmax - 2*neg
    return jnp.mean(s - vmax - 2.0 * neg)


# ----------------------------------------------------------------------- reference & demo run
def _reference_stage(beta10):
    """Plain-jnp reference for the fused Pallas stage (slice-based neighbor math)."""
    p = jnp.clip(jax.nn.softmax(beta10.astype(jnp.float32), axis=1), EPS, 1.0 - EPS)
    y = p[:, 1]
    eh = jnp.minimum(y[:, :, :-1], y[:, :, 1:])
    ev = jnp.minimum(y[:, :-1, :], y[:, 1:, :])
    ed = jnp.minimum(y[:, :-1, :-1], y[:, 1:, 1:])
    tu = jnp.minimum(jnp.minimum(y[:, :-1, :-1], y[:, :-1, 1:]), y[:, 1:, 1:])
    tl = jnp.minimum(jnp.minimum(y[:, :-1, :-1], y[:, 1:, :-1]), y[:, 1:, 1:])
    s = (eh.sum((1, 2)) + ev.sum((1, 2)) + ed.sum((1, 2))
         - tu.sum((1, 2)) - tl.sum((1, 2)) + y.sum((1, 2)))
    return y.reshape(y.shape[0], -1), s, y.max((1, 2))


if __name__ == "__main__":
    key = jax.random.PRNGKey(0)
    B, C, H, W = 20, 2, 16, 16                      # B // 10 = 2 samples enter the loss
    beta = jax.random.normal(key, (B, C, H, W), dtype=jnp.float32)
    beta10 = beta[: B // 10]
    HW = H * W

    # 1) fused softmax/clamp/filtration kernel vs plain-jnp reference
    y_k, s_k, vmax_k = jax.jit(_toploss_pallas_stage)(beta10)
    y_r, s_r, vmax_r = _reference_stage(beta10)
    np.testing.assert_allclose(np.asarray(y_k[:, :HW]), np.asarray(y_r), rtol=1e-5, atol=1e-6)
    np.testing.assert_allclose(np.asarray(s_k), np.asarray(s_r), rtol=1e-4, atol=1e-2)
    np.testing.assert_allclose(np.asarray(vmax_k), np.asarray(vmax_r), rtol=1e-5, atol=1e-6)

    # 2) SMEM scalar-unit union-find kernel vs the batched lax union-find
    eu, ev = _grid_edges(H, W)
    neg_p = jax.jit(lambda y: _neg_merge_sums(y, eu, ev, HW, True))(y_k)
    neg_l = jax.jit(lambda y: _neg_merge_sums(y, eu, ev, HW, False))(y_k)
    np.testing.assert_allclose(np.asarray(neg_p), np.asarray(neg_l), rtol=1e-5, atol=1e-4)

    # 3) end-to-end loss
    loss = jax.block_until_ready(jax.jit(top_loss)(beta))
    assert np.isfinite(float(loss))
    print("KERNEL_OK")
</pallas_src>

<mosaic_0001>
module attributes {stable_mosaic.version = 11 : i64} {
  func.func @_toploss_kernel(%arg0: i32, %arg1: memref<1x2x256xf32, #tpu.memory_space<vmem>>, %arg2: memref<8x256xf32, #tpu.memory_space<vmem>>, %arg3: memref<1x1x256xf32, #tpu.memory_space<vmem>>, %arg4: memref<1x2x128xf32, #tpu.memory_space<vmem>>) attributes {dimension_semantics = [#tpu.dimension_semantics<parallel>], iteration_bounds = array<i64: 2>, scalar_prefetch = 0 : i64, scratch_operands = 0 : i64, tpu.core_type = #tpu.core_type<tc>, window_params = [{transform_indices = @transform_0, window_bounds = array<i64: 1, 2, 256>}, {pipeline_mode = #tpu.pipeline_mode<synchronous>, transform_indices = @transform_1, window_bounds = array<i64: 8, 256>}, {transform_indices = @transform_2, window_bounds = array<i64: 1, 1, 256>}, {transform_indices = @transform_3, window_bounds = array<i64: 1, 2, 128>}]} {
    %c0 = arith.constant 0 : index
    %c0_0 = arith.constant 0 : index
    %c0_1 = arith.constant 0 : index
    %0 = vector.load %arg1[%c0, %c0_0, %c0_1] : memref<1x2x256xf32, #tpu.memory_space<vmem>>, vector<1x1x256xf32>
    %1 = vector.shape_cast %0 : vector<1x1x256xf32> to vector<1x256xf32>
    %c0_2 = arith.constant 0 : index
    %c1 = arith.constant 1 : index
    %c0_3 = arith.constant 0 : index
    %2 = vector.load %arg1[%c0_2, %c1, %c0_3] : memref<1x2x256xf32, #tpu.memory_space<vmem>>, vector<1x1x256xf32>
    %3 = vector.shape_cast %2 : vector<1x1x256xf32> to vector<1x256xf32>
    %4 = arith.subf %1, %3 : vector<1x256xf32>
    %5 = math.exp %4 : vector<1x256xf32>
    %cst = arith.constant 1.000000e+00 : f32
    %6 = vector.broadcast %cst : f32 to vector<1x256xf32>
    %7 = arith.addf %6, %5 : vector<1x256xf32>
    %cst_4 = arith.constant 1.000000e+00 : f32
    %8 = vector.broadcast %cst_4 : f32 to vector<1x256xf32>
    %9 = arith.divf %8, %7 : vector<1x256xf32>
    %cst_5 = arith.constant 1.000000e-07 : f32
    %cst_6 = arith.constant 0.99999988 : f32
    %10 = vector.broadcast %cst_5 : f32 to vector<1x256xf32>
    %11 = arith.maximumf %10, %9 : vector<1x256xf32>
    %12 = vector.broadcast %cst_6 : f32 to vector<1x256xf32>
    %13 = arith.minimumf %12, %11 : vector<1x256xf32>
    %c0_7 = arith.constant 0 : index
    %c0_8 = arith.constant 0 : index
    %c0_9 = arith.constant 0 : index
    %14 = vector.load %arg3[%c0_7, %c0_8, %c0_9] : memref<1x1x256xf32, #tpu.memory_space<vmem>>, vector<1x1x256xf32>
    %15 = vector.shape_cast %14 : vector<1x1x256xf32> to vector<1x256xf32>
    %16 = vector.shape_cast %13 : vector<1x256xf32> to vector<1x1x256xf32>
    tpu.vector_store %arg3[%c0_7, %c0_8, %c0_9], %16 {strides = array<i32>} : memref<1x1x256xf32, #tpu.memory_space<vmem>>, vector<1x1x256xf32>,
    %c0_10 = arith.constant 0 : index
    %c0_11 = arith.constant 0 : index
    %17 = vector.load %arg2[%c0_10, %c0_11] : memref<8x256xf32, #tpu.memory_space<vmem>>, vector<1x256xf32>
    %c1_12 = arith.constant 1 : index
    %c0_13 = arith.constant 0 : index
    %18 = vector.load %arg2[%c1_12, %c0_13] : memref<8x256xf32, #tpu.memory_space<vmem>>, vector<1x256xf32>
    %c2 = arith.constant 2 : index
    %c0_14 = arith.constant 0 : index
    %19 = vector.load %arg2[%c2, %c0_14] : memref<8x256xf32, #tpu.memory_space<vmem>>, vector<1x256xf32>
    %c3 = arith.constant 3 : index
    %c0_15 = arith.constant 0 : index
    %20 = vector.load %arg2[%c3, %c0_15] : memref<8x256xf32, #tpu.memory_space<vmem>>, vector<1x256xf32>
    %c255_i32 = arith.constant 255 : i32
    %21 = tpu.dynamic_rotate %13 by %c255_i32 dim 1 : vector<1x256xf32>, i32 -> vector<1x256xf32>
    %22 = arith.minimumf %13, %21 : vector<1x256xf32>
    %c240_i32 = arith.constant 240 : i32
    %23 = tpu.dynamic_rotate %13 by %c240_i32 dim 1 : vector<1x256xf32>, i32 -> vector<1x256xf32>
    %24 = arith.minimumf %13, %23 : vector<1x256xf32>
    %c240_i32_16 = arith.constant 240 : i32
    %25 = tpu.dynamic_rotate %21 by %c240_i32_16 dim 1 : vector<1x256xf32>, i32 -> vector<1x256xf32>
    %26 = arith.mulf %17, %22 : vector<1x256xf32>
    %27 = arith.mulf %18, %24 : vector<1x256xf32>
    %28 = arith.addf %26, %27 : vector<1x256xf32>
    %29 = arith.mulf %20, %13 : vector<1x256xf32>
    %30 = arith.addf %28, %29 : vector<1x256xf32>
    %31 = arith.minimumf %13, %25 : vector<1x256xf32>
    %32 = arith.minimumf %22, %25 : vector<1x256xf32>
    %33 = arith.subf %31, %32 : vector<1x256xf32>
    %34 = arith.minimumf %24, %25 : vector<1x256xf32>
    %35 = arith.subf %33, %34 : vector<1x256xf32>
    %36 = arith.mulf %19, %35 : vector<1x256xf32>
    %37 = arith.addf %30, %36 : vector<1x256xf32>
    %cst_17 = arith.constant dense<0.000000e+00> : vector<1xf32>
    %38 = vector.multi_reduction <add>, %37, %cst_17 [1] : vector<1x256xf32> to vector<1xf32>
    %39 = vector.shape_cast %38 : vector<1xf32> to vector<1x1xf32>
    %40 = arith.mulf %20, %13 : vector<1x256xf32>
    %cst_18 = arith.constant dense<0xFF800000> : vector<1xf32>
    %41 = vector.multi_reduction <maximumf>, %40, %cst_18 [1] : vector<1x256xf32> to vector<1xf32>
    %42 = vector.shape_cast %41 : vector<1xf32> to vector<1x1xf32>
    %43 = vector.shape_cast %39 : vector<1x1xf32> to vector<1x1xf32>
    %44 = vector.broadcast %43 : vector<1x1xf32> to vector<1x128xf32>
    %c0_19 = arith.constant 0 : index
    %c0_20 = arith.constant 0 : index
    %c0_21 = arith.constant 0 : index
    %45 = vector.load %arg4[%c0_19, %c0_20, %c0_21] : memref<1x2x128xf32, #tpu.memory_space<vmem>>, vector<1x1x128xf32>
    %46 = vector.shape_cast %45 : vector<1x1x128xf32> to vector<1x128xf32>
    %47 = vector.shape_cast %44 : vector<1x128xf32> to vector<1x1x128xf32>
    tpu.vector_store %arg4[%c0_19, %c0_20, %c0_21], %47 {strides = array<i32>} : memref<1x2x128xf32, #tpu.memory_space<vmem>>, vector<1x1x128xf32>,
    %48 = vector.shape_cast %42 : vector<1x1xf32> to vector<1x1xf32>
    %49 = vector.broadcast %48 : vector<1x1xf32> to vector<1x128xf32>
    %c0_22 = arith.constant 0 : index
    %c1_23 = arith.constant 1 : index
    %c0_24 = arith.constant 0 : index
    %50 = vector.load %arg4[%c0_22, %c1_23, %c0_24] : memref<1x2x128xf32, #tpu.memory_space<vmem>>, vector<1x1x128xf32>
    %51 = vector.shape_cast %50 : vector<1x1x128xf32> to vector<1x128xf32>
    %52 = vector.shape_cast %49 : vector<1x128xf32> to vector<1x1x128xf32>
    tpu.vector_store %arg4[%c0_22, %c1_23, %c0_24], %52 {strides = array<i32>} : memref<1x2x128xf32, #tpu.memory_space<vmem>>, vector<1x1x128xf32>,
    return
  }
  func.func @transform_0(%arg0: i32) -> (i32, i32, i32) {
    %c0_i32 = arith.constant 0 : i32
    %c0_i32_0 = arith.constant 0 : i32
    %c0_i32_1 = arith.constant 0 : i32
    return %arg0, %c0_i32, %c0_i32_0 : i32, i32, i32
  }
  func.func @transform_1(%arg0: i32) -> (i32, i32) {
    %c0_i32 = arith.constant 0 : i32
    %c0_i32_0 = arith.constant 0 : i32
    %c0_i32_1 = arith.constant 0 : i32
    return %c0_i32, %c0_i32_0 : i32, i32
  }
  func.func @transform_2(%arg0: i32) -> (i32, i32, i32) {
    %c0_i32 = arith.constant 0 : i32
    %c0_i32_0 = arith.constant 0 : i32
    %c0_i32_1 = arith.constant 0 : i32
    return %arg0, %c0_i32, %c0_i32_0 : i32, i32, i32
  }
  func.func @transform_3(%arg0: i32) -> (i32, i32, i32) {
    %c0_i32 = arith.constant 0 : i32
    %c0_i32_0 = arith.constant 0 : i32
    %c0_i32_1 = arith.constant 0 : i32
    return %arg0, %c0_i32, %c0_i32_0 : i32, i32, i32
  }
}

</mosaic_0001>

<bundles_post_ra>
// kernel: _toploss_pallas_stage.1
= control target key start
LH: loop header
LB: loop body
LE: loop exit
PB: predicated region body
PF: predicated region fallthrough
CT: control target
= control target key end

     0   :  { %s485_s12 = smov 0   ;;  %s552_s0 = inlined_call_operand.vmem [shape: f32[2,2,256], index: 0, kind: input, shape index: {}]   ;;  %s553_s1 = inlined_call_operand.vmem [shape: f32[8,256], index: 1, kind: input, shape index: {}]   ;;  %s554_s2 = inlined_call_operand.vmem [shape: f32[2,1,256], index: 2, kind: output, shape index: {0}]   ;;  %s555_s3 = inlined_call_operand.vmem [shape: f32[2,2,128], index: 3, kind: output, shape index: {1}]  }
   0x1 LB: > { %s423_s13 = sadd.s32 4294967295, %s460_s12   ;;  %p427_p0 = scmp.ge.s32.totalorder %s460_s12, 1  ;;  %s460_s12 = sphi %s485_s12, %s14_s12  }
   0x2   : > { %p140_p1 = scmp.lt.s32.totalorder %s460_s12, 3 }
   0x4   : > { %p141_p2 = pnand %p427_p0, %p140_p1 }
   0x5   : > { %p167_p3 = scmp.lt.s32.totalorder (!%p141_p2), %s423_s13, 1  ;;  %v191_v6 = vlaneseq (!%p141_p2)  ;;  %s462_s18 = smov (!%p141_p2), 112   ;;  %v464_v15 = vmov (!%p141_p2), 1966171168   ;;  %vm315_vm3 = vcmask (!%p141_p2), 1040384  }
   0x6   : > { %144 = sbr.rel (%p141_p2) target bundleno = 451 (0x1c3), region = 28  ;;  %s463_s19 = smov (!%p141_p2), 127   ;;  %v227_v16 = vunpack.c.l.s4 (!%p141_p2), %v464_v15  ;;  %v433_v32 = vld [vmem:[%s553_s1 + $0x1] ss:$8 sm:$0x3] (!%p141_p2) }
   0x7   : > { %v205_v7 = vshrl.u32 (!%p141_p2), %v191_v6, 7  ;;  %v219_v17 = vand.u32 (!%p141_p2), 127, %v191_v6  ;;  %v196_v35 = vld [vmem:[%s553_s1] ss:$8 sm:$0x3] (!%p141_p2)  ;;  %vm193_vm2 = vcmp.lt.s32.totalorder (!%p141_p2), %v191_v6, 256 }
   0x8   : > { %v228_v18 = vunpack.c.0.s8 (!%p141_p2), %v227_v16  ;;  %v435_v36 = vld [vmem:[%s553_s1 + $0x3] ss:$8 sm:$0x3] (!%p141_p2)  ;;  %v434_v60 = vld [vmem:[%s553_s1 + $0x2] ss:$8 sm:$0x3] (!%p141_p2) }
   0x9   : > { %v499_v10 = vsub.s32 (!%p141_p2), 0, %v205_v7  ;;  %v503_v12 = vsub.s32 (!%p141_p2), 1, %v205_v7  ;;  %vm246_vm0 = vcmp.lt.s32.totalorder (!%p141_p2), %v219_v17, 112  ;;  %vm220_vm1 = vcmp.lt.s32.totalorder (!%p141_p2), %v219_v17, 127 }
   0xa   : > { %v231_v21 = vsub.s32 (!%p141_p2), %v228_v18, %v205_v7 }
   0xd   : > { %s557_s13 = smov (!%p167_p3, %s423_s13), 1 }
   0xe   : > { %s438_s14 = sshll.u32 %s557_s13, 2  ;;  %s430_s26 = sshll.u32 %s557_s13, 1 }
   0xf   : > { %s171_s17 = scalar_lea.vmem %s552_s0, %s438_s14  ;;  %s175_s29 = scalar_lea.vmem %s554_s2, %s430_s26 }
  0x10   : > { %v180_v0 = vld [vmem:[%s171_s17] ss:$2 sm:$0x3]  ;;  %v432_v1 = vld [vmem:[%s171_s17 + $0x1] ss:$2 sm:$0x3]  ;;  %s179_s7 = scalar_lea.vmem %s555_s3, %s430_s26 }
  0x11   : > { %v183_v2 = vsub.f32 %v180_v0, %v432_v1 }
  0x13   : > { %v184_v3 = vmul.f32 1.442695, %v183_v2 }
  0x15   : > { %450 = vpow2.f32 %v184_v3 }
  0x1f   : > { %v451_v4 = vpop.eup %450 }
  0x20   : > { %v186_v5 = vadd.f32 1.0, %v451_v4 }
  0x22   : > { %452 = vrcp.f32 %v186_v5 }
  0x2c   : > { %v453_v8 = vpop.eup %452 }
  0x2d   : > { %v189_v9 = vmax.f32 %v453_v8, 1e-07 }
  0x2f   : > { %v501_v11 = vmin.f32 %v189_v9, 0.9999999 }
  0x31   : > { %v207_v13 = vrot.slane %v501_v11, %v499_v10  ;;  %v211_v14 = vrot.slane %v501_v11, %v503_v12  ;;  %v277_v41 = vmul.f32 %v435_v36, %v501_v11  ;;  %195 = vst.msk [vmem:[%s175_s29] sm:$0x3] %vm193_vm2, %v501_v11 }
  0x33   : > { %242 = vrot.lane.b32.xlu1 %v207_v13, %s462_s18  ;;  %214 = vrot.lane.b32.xlu0 %v207_v13, %s463_s19  ;;  %v325_v44 = vrot.slane %v277_v41, %v499_v10  ;;  %v329_v45 = vrot.slane %v277_v41, %v503_v12 }
  0x35   : > { %v332_v46 = vsel %vm315_vm3, %v325_v44, -inf  ;;  %v333_v47 = vsel %vm315_vm3, %v329_v45, -inf }
  0x36   : > { %v334_v48 = vmax.f32 %v332_v46, %v333_v47 }
  0x37   : > { %244 = vrot.lane.b32.xlu1 %v211_v14, %s462_s18  ;;  %216 = vrot.lane.b32.xlu0 %v211_v14, %s463_s19 }
  0xa5   : > { %v243_v19 = vpop.permute.xlu1 %242  ;;  %v215_v20 = vpop.permute.xlu0 %214 }
  0xa9   : > { %v245_v22 = vpop.permute.xlu1 %244  ;;  %v217_v23 = vpop.permute.xlu0 %216 }
  0xaa   : > { %v247_v24 = vsel %vm246_vm0, %v243_v19, %v245_v22  ;;  %v248_v25 = vsel %vm246_vm0, %v245_v22, %v243_v19  ;;  %v222_v26 = vsel %vm220_vm1, %v217_v23, %v215_v20  ;;  %v221_v27 = vsel %vm220_vm1, %v215_v20, %v217_v23 }
  0xab   : > { %v251_v28 = vcombine.low %v247_v24, %v248_v25  ;;  %270 = vrot.lane.b32.xlu1 %v222_v26, %s462_s18  ;;  %268 = vrot.lane.b32.xlu0 %v221_v27, %s462_s18  ;;  %v225_v29 = vcombine.low %v221_v27, %v222_v26 }
  0xad   : > { %v258_v30 = vrot.slane %v251_v28, %v231_v21  ;;  %v232_v31 = vrot.slane %v225_v29, %v231_v21 }
  0xaf   : > { %v265_v33 = vrot.slane %v258_v30, %v231_v21  ;;  %v239_v34 = vrot.slane %v232_v31, %v231_v21 }
  0xb1   : > { %v267_v37 = vmin.f32 %v501_v11, %v265_v33  ;;  %v241_v38 = vmin.f32 %v501_v11, %v239_v34 }
  0xb3   : > { %v275_v39 = vmul.f32 %v433_v32, %v267_v37  ;;  %v274_v40 = vmul.f32 %v241_v38, %v196_v35 }
  0xb5   : > { %v276_v42 = vadd.f32 %v275_v39, %v274_v40 }
  0xb7   : > { %v278_v43 = vadd.f32 %v277_v41, %v276_v42 }
  0xcf   : > { %335 = vmax.xlane.f32.xlu1 %v334_v48 }
 0x11d   : > { %v271_v49 = vpop.permute.xlu1 %270  ;;  %v269_v50 = vpop.permute.xlu0 %268 }
 0x11e   : > { %v272_v51 = vsel %vm246_vm0, %v269_v50, %v271_v49  ;;  %v273_v52 = vsel %vm246_vm0, %v271_v49, %v269_v50 }
 0x11f   : > { %v281_v53 = vcombine.low %v272_v51, %v273_v52 }
 0x121   : > { %v288_v54 = vrot.slane %v281_v53, %v231_v21 }
 0x123   : > { %v295_v55 = vrot.slane %v288_v54, %v231_v21 }
 0x125   : > { %v297_v56 = vmin.f32 %v501_v11, %v295_v55  ;;  %v298_v57 = vmin.f32 %v241_v38, %v295_v55  ;;  %v300_v58 = vmin.f32 %v267_v37, %v295_v55 }
 0x127   : > { %v299_v59 = vsub.f32 %v297_v56, %v298_v57 }
 0x129   : > { %v301_v61 = vsub.f32 %v299_v59, %v300_v58 }
 0x12b   : > { %v302_v62 = vmul.f32 %v434_v60, %v301_v61 }
 0x12d   : > { %v303_v63 = vadd.f32 %v302_v62, %v278_v43 }
 0x12f   : > { %v308_v0 = vrot.slane %v303_v63, %v499_v10  ;;  %v312_v1 = vrot.slane %v303_v63, %v503_v12 }
 0x131   : > { %v316_v2 = vsel %vm315_vm3, %v308_v0, 0.0  ;;  %v317_v3 = vsel %vm315_vm3, %v312_v1, 0.0 }
 0x132   : > { %v318_v4 = vadd.f32 %v317_v3, %v316_v2 }
 0x134   : > { %319 = vadd.xlane.f32.xlu0 %v318_v4 }
 0x15c   : > { %v336_v5 = vpop.xlane.xlu1 %335 }
 0x15d   : > { %338 = vst [vmem:[%s179_s7 + $0x1] sm:$0x1] %v336_v5 }
 0x1c1   : > { %v320_v6 = vpop.xlane.xlu0 %319 }
 0x1c2   : > { %337 = vst [vmem:[%s179_s7] sm:$0x1] %v320_v6 }
 0x1c3 PF: > { %s14_s12 = sadd.s32 1, %s460_s12  }
 0x1c4   : > { %p11_p4 = scmp.ge.s32.totalorder %s14_s12, 4  }
 0x1c6   :  { %13 = sbr.rel (!%p11_p4) target bundleno = 1 (0x1), region = 74 }

</bundles_post_ra>
